<compile_context>
chip_gen: v5e
topology: v5e:2x2
jax: 0.10.0
libtpu: 0.0.40
codegen_flags: <defaults>
</compile_context>

<pallas_src>
import jax
import jax.numpy as jnp
from jax.experimental import pallas as pl
from jax.experimental.pallas import tpu as pltpu


_LANES = 128


# ----------------------------- helpers ------------------------------------ #
def _hswish(x):
    # PyTorch nn.Hardswish: x * relu6(x + 3) / 6
    return x * jnp.clip(x + 3.0, 0.0, 6.0) * (1.0 / 6.0)


def fold_bn(gamma, beta, mean, var, eps=1e-5):
    scale = gamma / jnp.sqrt(var + eps)
    shift = beta - mean * scale
    return scale, shift


def _round8(v):
    return (v + 7) // 8 * 8


# ----------------------------- wrapper ------------------------------------- #
def efficientvit_cls_forward(x_nchw, params, batch_block=None):
    """Fused forward: synthetic backbone stem + exact ClsHead.  x: NCHW."""
    N, Cin, H, W = x_nchw.shape
    HW = H * W

    w_stem = params["w_stem"]          # (Cin, Cb)
    w_hc = params["w_hc"]              # (Cb, C0)
    w1 = params["w1"]                  # (C0, C1)
    w2 = params["w2"]                  # (C1, NC)
    Cb = w_stem.shape[1]
    C0, C1 = w1.shape
    NC = w2.shape[1]
    assert max(Cin + 1, Cb + 1, C1, NC) <= _LANES, "toy sizes assumed <= 128"

    # Images per grid step.  Default: whole batch in one step (best on
    # v5e/v6e, grid is a serial loop).  On v7x pass batch_block=N//2 so both
    # TensorCores get a "parallel" step.
    if batch_block is None:
        batch_block = N
    assert N % batch_block == 0
    Nb = batch_block
    nblk = N // Nb

    # --- one-time XLA-side layout: (N,Cin,H,W) -> (nblk, Cin, Nb*HW) -------- #
    x = (x_nchw.reshape(nblk, Nb, Cin, HW)
               .transpose(0, 2, 1, 3)
               .reshape(nblk, Cin, Nb * HW))

    # --- fold BN scales into the conv weights (exact, f32) ----------------- #
    wst_f = (w_stem * params["stem_scale"][None, :]).T        # (Cb, Cin)
    whc_f = (w_hc * params["hc_scale"][None, :]).T            # (C0, Cb)

    # --- pack every parameter into one (rows, 128) f32 slab ---------------- #
    R_STEM = 0                          # Cb rows : cols[0:Cin]=W, col Cin = shift
    R_HEAD = _round8(R_STEM + Cb)       # C0 rows : cols[0:Cb]=W,  col Cb  = shift
    R_W1 = _round8(R_HEAD + C0)         # C0 rows : cols[0:C1] = w1
    R_LN = _round8(R_W1 + C0)           # row 0 = ln gamma, row 1 = ln beta
    R_W2 = R_LN + 8                     # C1 rows : cols[0:NC] = w2 (lane-padded)
    R_B2 = _round8(R_W2 + C1)           # row 0 = b2 (lane-padded)
    ROWS = R_B2 + 8

    slab = jnp.zeros((ROWS, _LANES), jnp.float32)
    slab = slab.at[R_STEM:R_STEM + Cb, 0:Cin].set(wst_f)
    slab = slab.at[R_STEM:R_STEM + Cb, Cin].set(params["stem_shift"])
    slab = slab.at[R_HEAD:R_HEAD + C0, 0:Cb].set(whc_f)
    slab = slab.at[R_HEAD:R_HEAD + C0, Cb].set(params["hc_shift"])
    slab = slab.at[R_W1:R_W1 + C0, 0:C1].set(w1)
    slab = slab.at[R_LN, 0:C1].set(params["ln_g"])
    slab = slab.at[R_LN + 1, 0:C1].set(params["ln_b"])
    slab = slab.at[R_W2:R_W2 + C1, 0:NC].set(w2)
    slab = slab.at[R_B2, 0:NC].set(params["b2"])

    def kernel(x_ref, p_ref, o_ref):
        f32 = jnp.float32
        bf16 = jnp.bfloat16
        xb = x_ref[0]                                            # (Cin, Nb*HW)

        # synthetic backbone stem: 1x1 conv on the MXU (K=3 padded) + hswish
        wst = p_ref[R_STEM:R_STEM + Cb, 0:Cin]
        bst = p_ref[R_STEM:R_STEM + Cb, Cin:Cin + 1]
        feat = jnp.dot(wst.astype(bf16), xb.astype(bf16),
                       preferred_element_type=f32)
        feat = _hswish(feat + bst)                               # (Cb, Nb*HW)

        # ClsHead ConvLayer(1x1, bn2d folded, hswish) on the MXU
        whc = p_ref[R_HEAD:R_HEAD + C0, 0:Cb]
        bhc = p_ref[R_HEAD:R_HEAD + C0, Cb:Cb + 1]
        y = jnp.dot(whc.astype(bf16), feat.astype(bf16),
                    preferred_element_type=f32)
        y = _hswish(y + bhc)                                     # (C0, Nb*HW)

        # AdaptiveAvgPool2d(1) + LinearLayer(C0->C1, bias=False) per image.
        # Sublane-reduce contraction (fine at 32x48 per review; switch to an
        # MXU dot once C0/C1 grow).  Rows assembled with iota masks so no
        # concat/transpose is needed.
        w1v = p_ref[R_W1:R_W1 + C0, 0:C1]
        row_id = jax.lax.broadcasted_iota(jnp.int32, (Nb, C1), 0)
        h = jnp.zeros((Nb, C1), f32)
        for n in range(Nb):
            pooled_n = jnp.mean(y[:, n * HW:(n + 1) * HW], axis=1,
                                keepdims=True)                   # (C0, 1)
            h_n = jnp.sum(pooled_n * w1v, axis=0, keepdims=True)  # (1, C1)
            h = jnp.where(row_id == n, h_n, h)

        # LayerNorm(eps=1e-5) + hswish
        g = p_ref[R_LN:R_LN + 1, 0:C1]
        bln = p_ref[R_LN + 1:R_LN + 2, 0:C1]
        mu = jnp.mean(h, axis=-1, keepdims=True)
        var = jnp.mean((h - mu) ** 2, axis=-1, keepdims=True)
        h = (h - mu) * jax.lax.rsqrt(var + 1e-5)
        h = _hswish(h * g + bln)

        # final LinearLayer(C1 -> n_classes, bias=True); NC padded to 128
        # lanes so the store is a single unmasked lane-dense write.
        w2v = p_ref[R_W2:R_W2 + C1, :]
        b2v = p_ref[R_B2:R_B2 + 1, :]
        logits = jnp.dot(h.astype(bf16), w2v.astype(bf16),
                         preferred_element_type=f32) + b2v       # (Nb, 128)
        o_ref[0] = logits.astype(o_ref.dtype)

    cost = pl.CostEstimate(
        flops=2 * N * HW * (Cin * Cb + Cb * C0) + 2 * N * (C0 * C1 + C1 * NC),
        transcendentals=N,                       # LayerNorm rsqrt per image
        bytes_accessed=4 * (x.size + slab.size + nblk * Nb * _LANES),
    )

    out = pl.pallas_call(
        kernel,
        out_shape=jax.ShapeDtypeStruct((nblk, Nb, _LANES), jnp.float32),
        grid=(nblk,),
        in_specs=[
            pl.BlockSpec((1, Cin, Nb * HW), lambda i: (i, 0, 0)),
            pl.BlockSpec((ROWS, _LANES), lambda i: (0, 0)),
        ],
        out_specs=pl.BlockSpec((1, Nb, _LANES), lambda i: (i, 0, 0)),
        compiler_params=pltpu.CompilerParams(
            dimension_semantics=("parallel",)),
        cost_estimate=cost,
    )(x, slab)
    return out.reshape(N, _LANES)[:, :NC]


# pure-JAX reference mirroring the kernel's numerics (BN folded into the conv
# weights, bf16 MXU operands with f32 accumulation for the conv / final dots,
# f32 for the small pooled@w1 contraction) so the tolerance can stay tight.
def reference_forward(x_nchw, params):
    hi = jax.lax.Precision.HIGHEST
    f32 = jnp.float32

    def bdot(a, bm):
        return jnp.dot(a.astype(jnp.bfloat16), bm.astype(jnp.bfloat16),
                       preferred_element_type=f32)

    N, Cin, H, W = x_nchw.shape
    x = jnp.transpose(x_nchw, (0, 2, 3, 1)).reshape(N, H * W, Cin)
    w_stem_f = params["w_stem"] * params["stem_scale"][None, :]
    feat = _hswish(bdot(x, w_stem_f) + params["stem_shift"])
    w_hc_f = params["w_hc"] * params["hc_scale"][None, :]
    y = _hswish(bdot(feat, w_hc_f) + params["hc_shift"])
    pooled = jnp.mean(y, axis=1)                              # (N, C0)
    h = jnp.dot(pooled, params["w1"], precision=hi)           # f32, as kernel
    mu = jnp.mean(h, axis=-1, keepdims=True)
    var = jnp.mean((h - mu) ** 2, axis=-1, keepdims=True)
    h = (h - mu) * jax.lax.rsqrt(var + 1e-5)
    h = _hswish(h * params["ln_g"] + params["ln_b"])
    return bdot(h, params["w2"]) + params["b2"]


# ----------------------------- main ---------------------------------------- #
if __name__ == "__main__":
    # Shapes consistent with the module:
    #   image:            (N=2, 3, 16, 16)
    #   backbone feature: 16 channels ("stage_final")
    #   ClsHead:          in_channels=16, width_list=[32, 48], n_classes=10
    N, Cimg, H, W = 2, 3, 16, 16
    Cb = 16              # backbone output channels (= head in_channels)
    C0, C1 = 32, 48      # width_list
    NCLS = 10            # n_classes

    key = jax.random.PRNGKey(0)
    ks = jax.random.split(key, 16)

    def nrm(k, shape, s=0.1):
        return (s * jax.random.normal(k, shape)).astype(jnp.float32)

    # synthetic backbone stem: 1x1 conv (3->16) + bn2d + hswish
    w_stem = nrm(ks[0], (Cimg, Cb))
    stem_scale, stem_shift = fold_bn(
        1.0 + nrm(ks[1], (Cb,)), nrm(ks[2], (Cb,)),
        nrm(ks[3], (Cb,)), 1.0 + jnp.abs(nrm(ks[4], (Cb,))))

    # ClsHead ConvLayer(16->32, 1x1, bn2d, hswish)
    w_hc = nrm(ks[5], (Cb, C0))
    hc_scale, hc_shift = fold_bn(
        1.0 + nrm(ks[6], (C0,)), nrm(ks[7], (C0,)),
        nrm(ks[8], (C0,)), 1.0 + jnp.abs(nrm(ks[9], (C0,))))

    # LinearLayer(32->48, bias=False, norm='ln', act=hswish)
    w1 = nrm(ks[10], (C0, C1))
    ln_g = 1.0 + nrm(ks[11], (C1,))
    ln_b = nrm(ks[12], (C1,))

    # LinearLayer(48->10, bias=True, dropout=0, norm=None, act=None)
    w2 = nrm(ks[13], (C1, NCLS))
    b2 = nrm(ks[14], (NCLS,))

    params = dict(w_stem=w_stem, stem_scale=stem_scale, stem_shift=stem_shift,
                  w_hc=w_hc, hc_scale=hc_scale, hc_shift=hc_shift,
                  w1=w1, ln_g=ln_g, ln_b=ln_b, w2=w2, b2=b2)

    x = jax.random.normal(ks[15], (N, Cimg, H, W), dtype=jnp.float32)

    fwd = jax.jit(efficientvit_cls_forward)
    out = jax.block_until_ready(fwd(x, params))

    ref = reference_forward(x, params)
    assert out.shape == (N, NCLS)
    assert jnp.allclose(out, ref, atol=1e-3, rtol=1e-3), "mismatch vs reference"

    print("KERNEL_OK")
</pallas_src>

<mosaic_0001>
module attributes {stable_mosaic.version = 11 : i64} {
  func.func @kernel(%arg0: i32, %arg1: memref<1x3x512xf32, #tpu.memory_space<vmem>>, %arg2: memref<144x128xf32, #tpu.memory_space<vmem>>, %arg3: memref<1x2x128xf32, #tpu.memory_space<vmem>>) attributes {dimension_semantics = [#tpu.dimension_semantics<parallel>], iteration_bounds = array<i64: 1>, scalar_prefetch = 0 : i64, scratch_operands = 0 : i64, tpu.core_type = #tpu.core_type<tc>, window_params = [{transform_indices = @transform_0, window_bounds = array<i64: 1, 3, 512>}, {pipeline_mode = #tpu.pipeline_mode<synchronous>, transform_indices = @transform_1, window_bounds = array<i64: 144, 128>}, {transform_indices = @transform_2, window_bounds = array<i64: 1, 2, 128>}]} {
    %c0 = arith.constant 0 : index
    %c0_0 = arith.constant 0 : index
    %c0_1 = arith.constant 0 : index
    %0 = vector.load %arg1[%c0, %c0_0, %c0_1] : memref<1x3x512xf32, #tpu.memory_space<vmem>>, vector<1x3x512xf32>
    %1 = vector.shape_cast %0 : vector<1x3x512xf32> to vector<3x512xf32>
    %c0_2 = arith.constant 0 : index
    %c0_3 = arith.constant 0 : index
    %2 = vector.load %arg2[%c0_2, %c0_3] : memref<144x128xf32, #tpu.memory_space<vmem>>, vector<16x3xf32>
    %c0_4 = arith.constant 0 : index
    %c3 = arith.constant 3 : index
    %3 = vector.load %arg2[%c0_4, %c3] : memref<144x128xf32, #tpu.memory_space<vmem>>, vector<16x1xf32>
    %4 = arith.truncf %2 : vector<16x3xf32> to vector<16x3xbf16>
    %5 = arith.truncf %1 : vector<3x512xf32> to vector<3x512xbf16>
    %cst = arith.constant dense<0.000000e+00> : vector<16x512xf32>
    %6 = tpu.matmul %4, %5, %cst {dimension_numbers = #tpu.dot_dimension_numbers<[1], [0], [0], [1], [0, 0, 1, 1], [], []>} : vector<16x3xbf16>, vector<3x512xbf16>, vector<16x512xf32> -> vector<16x512xf32>
    %7 = vector.broadcast %3 : vector<16x1xf32> to vector<16x512xf32>
    %8 = arith.addf %6, %7 : vector<16x512xf32>
    %cst_5 = arith.constant 3.000000e+00 : f32
    %9 = vector.broadcast %cst_5 : f32 to vector<16x512xf32>
    %10 = arith.addf %8, %9 : vector<16x512xf32>
    %cst_6 = arith.constant 0.000000e+00 : f32
    %cst_7 = arith.constant 6.000000e+00 : f32
    %11 = vector.broadcast %cst_6 : f32 to vector<16x512xf32>
    %12 = arith.maximumf %11, %10 : vector<16x512xf32>
    %13 = vector.broadcast %cst_7 : f32 to vector<16x512xf32>
    %14 = arith.minimumf %13, %12 : vector<16x512xf32>
    %15 = arith.mulf %8, %14 : vector<16x512xf32>
    %cst_8 = arith.constant 0.166666672 : f32
    %16 = vector.broadcast %cst_8 : f32 to vector<16x512xf32>
    %17 = arith.mulf %15, %16 : vector<16x512xf32>
    %c16 = arith.constant 16 : index
    %c0_9 = arith.constant 0 : index
    %18 = vector.load %arg2[%c16, %c0_9] : memref<144x128xf32, #tpu.memory_space<vmem>>, vector<32x16xf32>
    %c16_10 = arith.constant 16 : index
    %c16_11 = arith.constant 16 : index
    %19 = vector.load %arg2[%c16_10, %c16_11] : memref<144x128xf32, #tpu.memory_space<vmem>>, vector<32x1xf32>
    %20 = arith.truncf %18 : vector<32x16xf32> to vector<32x16xbf16>
    %21 = arith.truncf %17 : vector<16x512xf32> to vector<16x512xbf16>
    %cst_12 = arith.constant dense<0.000000e+00> : vector<32x512xf32>
    %22 = tpu.matmul %20, %21, %cst_12 {dimension_numbers = #tpu.dot_dimension_numbers<[1], [0], [0], [1], [0, 0, 1, 1], [], []>} : vector<32x16xbf16>, vector<16x512xbf16>, vector<32x512xf32> -> vector<32x512xf32>
    %23 = vector.broadcast %19 : vector<32x1xf32> to vector<32x512xf32>
    %24 = arith.addf %22, %23 : vector<32x512xf32>
    %cst_13 = arith.constant 3.000000e+00 : f32
    %25 = vector.broadcast %cst_13 : f32 to vector<32x512xf32>
    %26 = arith.addf %24, %25 : vector<32x512xf32>
    %cst_14 = arith.constant 0.000000e+00 : f32
    %cst_15 = arith.constant 6.000000e+00 : f32
    %27 = vector.broadcast %cst_14 : f32 to vector<32x512xf32>
    %28 = arith.maximumf %27, %26 : vector<32x512xf32>
    %29 = vector.broadcast %cst_15 : f32 to vector<32x512xf32>
    %30 = arith.minimumf %29, %28 : vector<32x512xf32>
    %31 = arith.mulf %24, %30 : vector<32x512xf32>
    %cst_16 = arith.constant 0.166666672 : f32
    %32 = vector.broadcast %cst_16 : f32 to vector<32x512xf32>
    %33 = arith.mulf %31, %32 : vector<32x512xf32>
    %c48 = arith.constant 48 : index
    %c0_17 = arith.constant 0 : index
    %34 = vector.load %arg2[%c48, %c0_17] : memref<144x128xf32, #tpu.memory_space<vmem>>, vector<32x48xf32>
    %35 = tpu.iota {dimensions = array<i32: 0>} : vector<2x48xi32>
    %cst_18 = arith.constant 0.000000e+00 : f32
    %36 = vector.broadcast %cst_18 : f32 to vector<2x48xf32>
    %37 = vector.extract_strided_slice %33 {offsets = [0, 0], sizes = [32, 256], strides = [1, 1]} : vector<32x512xf32> to vector<32x256xf32>
    %cst_19 = arith.constant dense<0.000000e+00> : vector<32xf32>
    %38 = vector.multi_reduction <add>, %37, %cst_19 [1] : vector<32x256xf32> to vector<32xf32>
    %39 = vector.shape_cast %38 : vector<32xf32> to vector<32x1xf32>
    %cst_20 = arith.constant 2.560000e+02 : f32
    %40 = vector.broadcast %cst_20 : f32 to vector<32x1xf32>
    %41 = arith.divf %39, %40 : vector<32x1xf32>
    %42 = vector.broadcast %41 : vector<32x1xf32> to vector<32x48xf32>
    %43 = arith.mulf %42, %34 : vector<32x48xf32>
    %cst_21 = arith.constant dense<0.000000e+00> : vector<48xf32>
    %44 = vector.multi_reduction <add>, %43, %cst_21 [0] : vector<32x48xf32> to vector<48xf32>
    %45 = vector.shape_cast %44 : vector<48xf32> to vector<1x48xf32>
    %c0_i32 = arith.constant 0 : i32
    %46 = vector.broadcast %c0_i32 : i32 to vector<2x48xi32>
    %47 = arith.cmpi eq, %35, %46 : vector<2x48xi32>
    %48 = vector.shape_cast %45 : vector<1x48xf32> to vector<1x48xf32>
    %49 = vector.broadcast %48 : vector<1x48xf32> to vector<2x48xf32>
    %50 = arith.select %47, %49, %36 : vector<2x48xi1>, vector<2x48xf32>
    %51 = vector.extract_strided_slice %33 {offsets = [0, 256], sizes = [32, 256], strides = [1, 1]} : vector<32x512xf32> to vector<32x256xf32>
    %cst_22 = arith.constant dense<0.000000e+00> : vector<32xf32>
    %52 = vector.multi_reduction <add>, %51, %cst_22 [1] : vector<32x256xf32> to vector<32xf32>
    %53 = vector.shape_cast %52 : vector<32xf32> to vector<32x1xf32>
    %cst_23 = arith.constant 2.560000e+02 : f32
    %54 = vector.broadcast %cst_23 : f32 to vector<32x1xf32>
    %55 = arith.divf %53, %54 : vector<32x1xf32>
    %56 = vector.broadcast %55 : vector<32x1xf32> to vector<32x48xf32>
    %57 = arith.mulf %56, %34 : vector<32x48xf32>
    %cst_24 = arith.constant dense<0.000000e+00> : vector<48xf32>
    %58 = vector.multi_reduction <add>, %57, %cst_24 [0] : vector<32x48xf32> to vector<48xf32>
    %59 = vector.shape_cast %58 : vector<48xf32> to vector<1x48xf32>
    %c1_i32 = arith.constant 1 : i32
    %60 = vector.broadcast %c1_i32 : i32 to vector<2x48xi32>
    %61 = arith.cmpi eq, %35, %60 : vector<2x48xi32>
    %62 = vector.shape_cast %59 : vector<1x48xf32> to vector<1x48xf32>
    %63 = vector.broadcast %62 : vector<1x48xf32> to vector<2x48xf32>
    %64 = arith.select %61, %63, %50 : vector<2x48xi1>, vector<2x48xf32>
    %c80 = arith.constant 80 : index
    %c0_25 = arith.constant 0 : index
    %65 = vector.load %arg2[%c80, %c0_25] : memref<144x128xf32, #tpu.memory_space<vmem>>, vector<1x48xf32>
    %c81 = arith.constant 81 : index
    %c0_26 = arith.constant 0 : index
    %66 = vector.load %arg2[%c81, %c0_26] : memref<144x128xf32, #tpu.memory_space<vmem>>, vector<1x48xf32>
    %cst_27 = arith.constant dense<0.000000e+00> : vector<2xf32>
    %67 = vector.multi_reduction <add>, %64, %cst_27 [1] : vector<2x48xf32> to vector<2xf32>
    %68 = vector.shape_cast %67 : vector<2xf32> to vector<2x1xf32>
    %cst_28 = arith.constant 4.800000e+01 : f32
    %69 = vector.broadcast %cst_28 : f32 to vector<2x1xf32>
    %70 = arith.divf %68, %69 : vector<2x1xf32>
    %71 = vector.broadcast %70 : vector<2x1xf32> to vector<2x48xf32>
    %72 = arith.subf %64, %71 : vector<2x48xf32>
    %73 = arith.mulf %72, %72 : vector<2x48xf32>
    %cst_29 = arith.constant dense<0.000000e+00> : vector<2xf32>
    %74 = vector.multi_reduction <add>, %73, %cst_29 [1] : vector<2x48xf32> to vector<2xf32>
    %75 = vector.shape_cast %74 : vector<2xf32> to vector<2x1xf32>
    %cst_30 = arith.constant 4.800000e+01 : f32
    %76 = vector.broadcast %cst_30 : f32 to vector<2x1xf32>
    %77 = arith.divf %75, %76 : vector<2x1xf32>
    %78 = vector.broadcast %70 : vector<2x1xf32> to vector<2x48xf32>
    %79 = arith.subf %64, %78 : vector<2x48xf32>
    %cst_31 = arith.constant 9.99999974E-6 : f32
    %80 = vector.broadcast %cst_31 : f32 to vector<2x1xf32>
    %81 = arith.addf %77, %80 : vector<2x1xf32>
    %82 = math.rsqrt %81 : vector<2x1xf32>
    %83 = vector.broadcast %82 : vector<2x1xf32> to vector<2x48xf32>
    %84 = arith.mulf %79, %83 : vector<2x48xf32>
    %85 = vector.broadcast %65 : vector<1x48xf32> to vector<2x48xf32>
    %86 = arith.mulf %84, %85 : vector<2x48xf32>
    %87 = vector.broadcast %66 : vector<1x48xf32> to vector<2x48xf32>
    %88 = arith.addf %86, %87 : vector<2x48xf32>
    %cst_32 = arith.constant 3.000000e+00 : f32
    %89 = vector.broadcast %cst_32 : f32 to vector<2x48xf32>
    %90 = arith.addf %88, %89 : vector<2x48xf32>
    %cst_33 = arith.constant 0.000000e+00 : f32
    %cst_34 = arith.constant 6.000000e+00 : f32
    %91 = vector.broadcast %cst_33 : f32 to vector<2x48xf32>
    %92 = arith.maximumf %91, %90 : vector<2x48xf32>
    %93 = vector.broadcast %cst_34 : f32 to vector<2x48xf32>
    %94 = arith.minimumf %93, %92 : vector<2x48xf32>
    %95 = arith.mulf %88, %94 : vector<2x48xf32>
    %cst_35 = arith.constant 0.166666672 : f32
    %96 = vector.broadcast %cst_35 : f32 to vector<2x48xf32>
    %97 = arith.mulf %95, %96 : vector<2x48xf32>
    %c88 = arith.constant 88 : index
    %c0_36 = arith.constant 0 : index
    %98 = vector.load %arg2[%c88, %c0_36] : memref<144x128xf32, #tpu.memory_space<vmem>>, vector<48x128xf32>
    %c136 = arith.constant 136 : index
    %c0_37 = arith.constant 0 : index
    %99 = vector.load %arg2[%c136, %c0_37] : memref<144x128xf32, #tpu.memory_space<vmem>>, vector<1x128xf32>
    %100 = arith.truncf %97 : vector<2x48xf32> to vector<2x48xbf16>
    %101 = arith.truncf %98 : vector<48x128xf32> to vector<48x128xbf16>
    %cst_38 = arith.constant dense<0.000000e+00> : vector<2x128xf32>
    %102 = tpu.matmul %100, %101, %cst_38 {dimension_numbers = #tpu.dot_dimension_numbers<[1], [0], [0], [1], [0, 0, 1, 1], [], []>} : vector<2x48xbf16>, vector<48x128xbf16>, vector<2x128xf32> -> vector<2x128xf32>
    %103 = vector.broadcast %99 : vector<1x128xf32> to vector<2x128xf32>
    %104 = arith.addf %102, %103 : vector<2x128xf32>
    %c0_39 = arith.constant 0 : index
    %c0_40 = arith.constant 0 : index
    %c0_41 = arith.constant 0 : index
    %105 = vector.load %arg3[%c0_39, %c0_40, %c0_41] : memref<1x2x128xf32, #tpu.memory_space<vmem>>, vector<1x2x128xf32>
    %106 = vector.shape_cast %105 : vector<1x2x128xf32> to vector<2x128xf32>
    %107 = vector.shape_cast %104 : vector<2x128xf32> to vector<1x2x128xf32>
    tpu.vector_store %arg3[%c0_39, %c0_40, %c0_41], %107 {strides = array<i32>} : memref<1x2x128xf32, #tpu.memory_space<vmem>>, vector<1x2x128xf32>,
    return
  }
  func.func @transform_0(%arg0: i32) -> (i32, i32, i32) {
    %c0_i32 = arith.constant 0 : i32
    %c0_i32_0 = arith.constant 0 : i32
    %c0_i32_1 = arith.constant 0 : i32
    return %arg0, %c0_i32, %c0_i32_0 : i32, i32, i32
  }
  func.func @transform_1(%arg0: i32) -> (i32, i32) {
    %c0_i32 = arith.constant 0 : i32
    %c0_i32_0 = arith.constant 0 : i32
    %c0_i32_1 = arith.constant 0 : i32
    return %c0_i32, %c0_i32_0 : i32, i32
  }
  func.func @transform_2(%arg0: i32) -> (i32, i32, i32) {
    %c0_i32 = arith.constant 0 : i32
    %c0_i32_0 = arith.constant 0 : i32
    %c0_i32_1 = arith.constant 0 : i32
    return %arg0, %c0_i32, %c0_i32_0 : i32, i32, i32
  }
}

</mosaic_0001>

<bundles_post_ra>
// kernel: efficientvit_cls_forward.1
= control target key start
LH: loop header
LB: loop body
LE: loop exit
PB: predicated region body
PF: predicated region fallthrough
CT: control target
= control target key end

     0   :  { %vm49_vm0 = vcmask 1040384   ;;  %v582_v3 = vmov 3   ;;  %vm50_vm1 = vcmask 1041408   ;;  %v583_v4 = vmov 65535   ;;  %s698_s0 = inlined_call_operand.vmem [shape: f32[1,3,512], index: 0, kind: input, shape index: {}]   ;;  %s699_s1 = inlined_call_operand.vmem [shape: f32[144,128], index: 1, kind: input, shape index: {}]   ;;  %s700_s2 = inlined_call_operand.hbm [shape: f32[1,2,128], index: 2, kind: output, shape index: {}]  }
   0x1   :  { %v13_v0 = vld [vmem:[%s698_s0] sm:$0x77]  ;;  %v14_v1 = vld [vmem:[%s698_s0 + $0x8] sm:$0x77]  ;;  %543 = vset.pattern.permute.xlu0 %v582_v3  ;;  %v51_v5 = vsel %vm49_vm0, 4294967295, %v583_v4 }
   0x2   :  { %20 = vst [vmem:[#allocation1] ss:$2 sm:$0xff] %v13_v0  ;;  %v15_v2 = vld [vmem:[%s699_s1] sm:$0xff] }
   0x3   :  { %22 = vst [vmem:[#allocation1 + $0x10] ss:$2 sm:$0xff] %v14_v1  ;;  %37 = vperm.xlu0 %543, %v15_v2  }
   0x4   :  { %7 = vsyncpa [#allocation3], 0  ;;  %v52_v6 = vsel %vm50_vm1, %v51_v5, 0  ;;  %v16_v7 = vld [vmem:[%s699_s1 + $0x8] sm:$0xff]  ;;  %vm45_vm2 = vcmask 23552   ;;  %v161_v26 = vld [vmem:[%s699_s1 + $0x10] sm:$0xff] }
   0x5   :  { %v17_v20 = vpack.c.bf16 %v16_v7, %v15_v2  ;;  %v584_v27 = vmov 16   ;;  %v621_v28 = vld [vmem:[%s699_s1 + $0x20] sm:$0xff]  ;;  %v162_v45 = vld [vmem:[%s699_s1 + $0x18] sm:$0xff]  ;;  %v164_v46 = vld [vmem:[%s699_s1 + $0x28] sm:$0xff]  ;;  %vm191_vm3 = vcmask 130048   ;;  %vm387_vm5 = vcmask 392192  }
   0x6   :  { %544 = vset.pattern.permute.xlu1 %v584_v27  ;;  %545 = vset.pattern.permute.xlu2 %v584_v27  ;;  %vm440_vm8 = vcmask 386048   ;;  %s587_s21 = smov [#allocation2]   ;;  %s515_s25 = sshll.u32 %s700_s2, 4  ;;  %s516_s25 = int_to_ptr.hbm [resolvable:$true] %s515_s25 }
   0x7   :  { %173 = vperm.xlu1 %544, %v161_v26   ;;  %183 = vperm.xlu2 %545, %v621_v28   ;;  %s513_s22 = sshll.u32 %s587_s21, 4  ;;  %s514_s22 = int_to_ptr.vmem [resolvable:$true] %s513_s22 }
   0x9   :  { %v23_v8 = vld.sshfl [vmem:[#allocation1] sm:$0xff pattern:$0x75316420]  ;;  %v24_v9 = vld.sshfl [vmem:[#allocation1 + $0x8] sm:$0xff pattern:$0x75316420] }
   0xa   :  { %v31_v10 = vpack.c.bf16 %v23_v8, %v23_v8  ;;  %v32_v11 = vpack.c.bf16 %v24_v9, %v24_v9  ;;  %v25_v12 = vld.sshfl [vmem:[#allocation1 + $0x10] sm:$0xff pattern:$0x75316420]  ;;  %v26_v13 = vld.sshfl [vmem:[#allocation1 + $0x18] sm:$0xff pattern:$0x75316420] }
   0xb   :  { %v33_v14 = vpack.c.bf16 %v25_v12, %v25_v12  ;;  %v34_v15 = vpack.c.bf16 %v26_v13, %v26_v13  ;;  %42 = vperm.xlu0 %543, %v16_v7  }
   0xc   :  { %v54_v16 = vand.u32 %v52_v6, %v31_v10  ;;  %v57_v17 = vand.u32 %v52_v6, %v32_v11 }
   0xd   :  { %v60_v18 = vand.u32 %v52_v6, %v33_v14  ;;  %v63_v19 = vand.u32 %v52_v6, %v34_v15 }
   0xe   :  { %72 = vmatpush.bf16.msra.mxu0 %v54_v16  ;;  %86 = vmatpush.bf16.msra.mxu1 %v57_v17  ;;  %v165_v16 = vpack.c.bf16 %v162_v45, %v161_v26 }
   0xf   :  { %100 = vmatpush.bf16.msra.mxu2 %v60_v18  ;;  %114 = vmatpush.bf16.msra.mxu3 %v63_v19 }
  0x10   :  { %178 = vperm.xlu1 %544, %v162_v45   ;;  %188 = vperm.xlu2 %545, %v164_v46  }
  0x11   :  { %524 = vmatmul.msk.bf16.vlgmr.msra.gmra.mxu0 %vm45_vm2, %v17_v20  ;;  %525 = vmatmul.msk.bf16.vlgmr.msra.gmra.mxu1 %vm45_vm2, %v17_v20 }
  0x12   :  { %526 = vmatmul.msk.bf16.vlgmr.msra.gmra.mxu2 %vm45_vm2, %v17_v20  ;;  %527 = vmatmul.msk.bf16.vlgmr.msra.gmra.mxu3 %vm45_vm2, %v17_v20 }
  0x13   :  { %546 = vset.pattern.permute.xlu0 %v584_v27 }
  0x75   :  { %v38_v21 = vpop.permute.xlu0 %37 }
  0x79   :  { %v174_v26 = vpop.permute.xlu1 %173 }
  0x7d   :  { %v43_v32 = vpop.permute.xlu0 %42 }
  0x8e   :  { %v74_v22 = vpop.f32.mrf.mxu0  ;;  %v88_v23 = vpop.f32.mrf.mxu1 }
  0x8f   :  { %v75_v24 = vadd.f32 %v74_v22, %v38_v21  ;;  %v89_v25 = vadd.f32 %v88_v23, %v38_v21 }
  0x91   :  { %v121_v29 = vadd.f32 3.0, %v75_v24  ;;  %v122_v30 = vadd.f32 3.0, %v89_v25 }
  0x93   :  { %v129_v31 = vmax.f32 %v121_v29, 0.0  ;;  %v130_v33 = vmax.f32 %v122_v30, 0.0 }
  0x95   :  { %v102_v34 = vpop.f32.mrf.mxu2  ;;  %v116_v35 = vpop.f32.mrf.mxu3  ;;  %v137_v42 = vmin.f32 %v129_v31, 6.0  ;;  %v138_v47 = vmin.f32 %v130_v33, 6.0 }
  0x96   :  { %v103_v36 = vadd.f32 %v102_v34, %v38_v21  ;;  %v117_v37 = vadd.f32 %v116_v35, %v38_v21  ;;  %v76_v38 = vpop.f32.mrf.mxu0  ;;  %v90_v39 = vpop.f32.mrf.mxu1 }
  0x97   :  { %v77_v40 = vadd.f32 %v76_v38, %v43_v32  ;;  %v91_v41 = vadd.f32 %v90_v39, %v43_v32  ;;  %v145_v53 = vmul.f32 %v137_v42, %v75_v24  ;;  %v146_v55 = vmul.f32 %v138_v47, %v89_v25 }
  0x98   :  { %v123_v43 = vadd.f32 3.0, %v103_v36  ;;  %v124_v44 = vadd.f32 3.0, %v117_v37  ;;  %v166_v25 = vpack.c.bf16 %v164_v46, %v621_v28 }
  0x99   :  { %v125_v48 = vadd.f32 3.0, %v77_v40  ;;  %v126_v49 = vadd.f32 3.0, %v91_v41  ;;  %v153_v1 = vmul.f32 0.16666667, %v145_v53  ;;  %v154_v5 = vmul.f32 0.16666667, %v146_v55 }
  0x9a   :  { %v131_v50 = vmax.f32 %v123_v43, 0.0  ;;  %v132_v54 = vmax.f32 %v124_v44, 0.0 }
  0x9b   :  { %v133_v51 = vmax.f32 %v125_v48, 0.0  ;;  %v134_v52 = vmax.f32 %v126_v49, 0.0  ;;  %v639_v48 = vpop.permute.xlu2 %183 }
  0x9c   :  { %v139_v62 = vmin.f32 %v131_v50, 6.0  ;;  %v140_v2 = vmin.f32 %v132_v54, 6.0 }
  0x9d   :  { %v141_v56 = vmin.f32 %v133_v51, 6.0  ;;  %v142_v57 = vmin.f32 %v134_v52, 6.0  ;;  %v104_v58 = vpop.f32.mrf.mxu2  ;;  %v118_v59 = vpop.f32.mrf.mxu3 }
  0x9e   :  { %v105_v60 = vadd.f32 %v104_v58, %v43_v32  ;;  %v119_v61 = vadd.f32 %v118_v59, %v43_v32  ;;  %v147_v10 = vmul.f32 %v139_v62, %v103_v36  ;;  %v148_v13 = vmul.f32 %v140_v2, %v117_v37  ;;  %v179_v36 = vpop.permute.xlu1 %178 }
  0x9f   :  { %v149_v63 = vmul.f32 %v141_v56, %v77_v40  ;;  %v150_v0 = vmul.f32 %v142_v57, %v91_v41 }
  0xa0   :  { %v127_v3 = vadd.f32 3.0, %v105_v60  ;;  %v128_v4 = vadd.f32 3.0, %v119_v61  ;;  %v155_v19 = vmul.f32 0.16666667, %v147_v10  ;;  %v156_v20 = vmul.f32 0.16666667, %v148_v13 }
  0xa1   :  { %v157_v6 = vmul.f32 0.16666667, %v149_v63  ;;  %v158_v7 = vmul.f32 0.16666667, %v150_v0 }
  0xa2   :  { %v135_v8 = vmax.f32 %v127_v3, 0.0  ;;  %v136_v9 = vmax.f32 %v128_v4, 0.0 }
  0xa3   :  { %v167_v11 = vpack.c.bf16 %v157_v6, %v153_v1  ;;  %v168_v12 = vpack.c.bf16 %v158_v7, %v154_v5 }
  0xa4   :  { %v143_v14 = vmin.f32 %v135_v8, 6.0  ;;  %v144_v15 = vmin.f32 %v136_v9, 6.0 }
  0xa5   :  { %205 = vmatpush.bf16.msrb.mxu0 %v167_v11  ;;  %224 = vmatpush.bf16.msrb.mxu1 %v168_v12 }
  0xa6   :  { %v151_v17 = vmul.f32 %v143_v14, %v105_v60  ;;  %v152_v18 = vmul.f32 %v144_v15, %v119_v61 }
  0xa8   :  { %v159_v21 = vmul.f32 0.16666667, %v151_v17  ;;  %v160_v22 = vmul.f32 0.16666667, %v152_v18  ;;  %528 = vmatmul.msk.bf16.vlgmr.msrb.gmra.mxu0 %vm191_vm3, %v165_v16  ;;  %530 = vmatmul.msk.bf16.vlgmr.msrb.gmra.mxu1 %vm191_vm3, %v165_v16 }
  0xaa   :  { %v169_v23 = vpack.c.bf16 %v159_v21, %v155_v19  ;;  %v170_v24 = vpack.c.bf16 %v160_v22, %v156_v20  ;;  %v189_v19 = vpop.permute.xlu2 %188 }
  0xac   :  { %243 = vmatpush.bf16.msrb.mxu2 %v169_v23  ;;  %262 = vmatpush.bf16.msrb.mxu3 %v170_v24 }
  0xaf   :  { %532 = vmatmul.msk.bf16.vlgmr.msrb.gmra.mxu2 %vm191_vm3, %v165_v16  ;;  %534 = vmatmul.msk.bf16.vlgmr.msrb.gmra.mxu3 %vm191_vm3, %v165_v16 }
  0xb8   :  { %529 = vmatmul.msk.bf16.gmra.mxu0 %vm191_vm3, %v166_v25  ;;  %531 = vmatmul.msk.bf16.gmra.mxu1 %vm191_vm3, %v166_v25 }
  0xbf   :  { %533 = vmatmul.msk.bf16.gmra.mxu2 %vm191_vm3, %v166_v25  ;;  %535 = vmatmul.msk.bf16.gmra.mxu3 %vm191_vm3, %v166_v25 }
 0x125   :  { %v207_v27 = vpop.f32.mrf.mxu0  ;;  %v226_v29 = vpop.f32.mrf.mxu1 }
 0x126   :  { %v208_v30 = vadd.f32 %v207_v27, %v174_v26  ;;  %v227_v31 = vadd.f32 %v226_v29, %v174_v26 }
 0x128   :  { %v274_v32 = vadd.f32 3.0, %v208_v30  ;;  %v275_v33 = vadd.f32 3.0, %v227_v31 }
 0x12a   :  { %v290_v34 = vmax.f32 %v274_v32, 0.0  ;;  %v291_v35 = vmax.f32 %v275_v33, 0.0 }
 0x12c   :  { %v306_v37 = vmin.f32 %v290_v34, 6.0  ;;  %v307_v28 = vmin.f32 %v291_v35, 6.0 }
 0x12d   :  { %v209_v38 = vpop.f32.mrf.mxu0  ;;  %v228_v39 = vpop.f32.mrf.mxu1 }
 0x12e   :  { %v210_v40 = vadd.f32 %v209_v38, %v179_v36  ;;  %v229_v41 = vadd.f32 %v228_v39, %v179_v36  ;;  %v322_v42 = vmul.f32 %v306_v37, %v208_v30  ;;  %v323_v43 = vmul.f32 %v307_v28, %v227_v31 }
 0x130   :  { %v338_v44 = vmul.f32 0.16666667, %v322_v42  ;;  %v339_v45 = vmul.f32 0.16666667, %v323_v43  ;;  %v278_v46 = vadd.f32 3.0, %v210_v40  ;;  %v279_v47 = vadd.f32 3.0, %v229_v41 }
 0x132   :  { %v245_v49 = vpop.f32.mrf.mxu2  ;;  %v264_v50 = vpop.f32.mrf.mxu3  ;;  %v360_v51 = vadd.f32 %v339_v45, %v338_v44  ;;  %v294_v52 = vmax.f32 %v278_v46, 0.0  ;;  %v295_v53 = vmax.f32 %v279_v47, 0.0 }
 0x133   :  { %v246_v54 = vadd.f32 %v245_v49, %v174_v26  ;;  %v265_v55 = vadd.f32 %v264_v50, %v174_v26 }
 0x134   :  { %361 = vadd.xlane.f32.xlu0 %v360_v51  ;;  %v310_v56 = vmin.f32 %v294_v52, 6.0  ;;  %v311_v57 = vmin.f32 %v295_v53, 6.0 }
 0x135   :  { %v276_v58 = vadd.f32 3.0, %v246_v54  ;;  %v277_v59 = vadd.f32 3.0, %v265_v55  ;;  %v212_v60 = vpop.f32.mrf.mxu0  ;;  %v231_v61 = vpop.f32.mrf.mxu1 }
 0x136   :  { %v213_v62 = vadd.f32 %v212_v60, %v639_v48  ;;  %v232_v63 = vadd.f32 %v231_v61, %v639_v48  ;;  %v326_v0 = vmul.f32 %v310_v56, %v210_v40  ;;  %v327_v1 = vmul.f32 %v311_v57, %v229_v41 }
 0x137   :  { %v292_v2 = vmax.f32 %v276_v58, 0.0  ;;  %v293_v3 = vmax.f32 %v277_v59, 0.0 }
 0x138   :  { %v282_v4 = vadd.f32 3.0, %v213_v62  ;;  %v283_v5 = vadd.f32 3.0, %v232_v63  ;;  %v342_v6 = vmul.f32 0.16666667, %v326_v0  ;;  %v343_v7 = vmul.f32 0.16666667, %v327_v1 }
 0x139   :  { %v308_v8 = vmin.f32 %v292_v2, 6.0  ;;  %v309_v9 = vmin.f32 %v293_v3, 6.0 }
 0x13a   :  { %v298_v10 = vmax.f32 %v282_v4, 0.0  ;;  %v299_v11 = vmax.f32 %v283_v5, 0.0  ;;  %v247_v12 = vpop.f32.mrf.mxu2  ;;  %v266_v13 = vpop.f32.mrf.mxu3  ;;  %v363_v14 = vadd.f32 %v343_v7, %v342_v6 }
 0x13b   :  { %v324_v15 = vmul.f32 %v308_v8, %v246_v54  ;;  %v325_v16 = vmul.f32 %v309_v9, %v265_v55  ;;  %v248_v17 = vadd.f32 %v247_v12, %v179_v36  ;;  %v267_v18 = vadd.f32 %v266_v13, %v179_v36 }
 0x13c   :  { %v314_v20 = vmin.f32 %v298_v10, 6.0  ;;  %v315_v21 = vmin.f32 %v299_v11, 6.0  ;;  %364 = vadd.xlane.f32.xlu1 %v363_v14 }
 0x13d   :  { %v340_v22 = vmul.f32 0.16666667, %v324_v15  ;;  %v341_v23 = vmul.f32 0.16666667, %v325_v16  ;;  %v280_v24 = vadd.f32 3.0, %v248_v17  ;;  %v281_v25 = vadd.f32 3.0, %v267_v18  ;;  %v214_v26 = vpop.f32.mrf.mxu0  ;;  %v233_v27 = vpop.f32.mrf.mxu1 }
 0x13e   :  { %v330_v29 = vmul.f32 %v314_v20, %v213_v62  ;;  %v331_v30 = vmul.f32 %v315_v21, %v232_v63  ;;  %v215_v31 = vadd.f32 %v214_v26, %v189_v19  ;;  %v234_v32 = vadd.f32 %v233_v27, %v189_v19 }
 0x13f   :  { %v296_v33 = vmax.f32 %v280_v24, 0.0  ;;  %v297_v34 = vmax.f32 %v281_v25, 0.0  ;;  %v403_v35 = vadd.f32 %v341_v23, %v340_v22  ;;  %v585_v23 = vmov 256.0  }
 0x140   :  { %v346_v37 = vmul.f32 0.16666667, %v330_v29  ;;  %v347_v28 = vmul.f32 0.16666667, %v331_v30  ;;  %v286_v36 = vadd.f32 3.0, %v215_v31  ;;  %v287_v38 = vadd.f32 3.0, %v234_v32 }
 0x141   :  { %v312_v39 = vmin.f32 %v296_v33, 6.0  ;;  %v313_v40 = vmin.f32 %v297_v34, 6.0  ;;  %404 = vadd.xlane.f32.xlu2 %v403_v35  ;;  %550 = vrcp.f32 %v585_v23 }
 0x142   :  { %v302_v41 = vmax.f32 %v286_v36, 0.0  ;;  %v303_v42 = vmax.f32 %v287_v38, 0.0  ;;  %v250_v43 = vpop.f32.mrf.mxu2  ;;  %v269_v44 = vpop.f32.mrf.mxu3  ;;  %v366_v45 = vadd.f32 %v347_v28, %v346_v37  ;;  %v355_v37 = vld [vmem:[%s699_s1 + $0x38] sm:$0xff]  ;;  %v354_v36 = vld [vmem:[%s699_s1 + $0x30] sm:$0xff] }
 0x143   :  { %v328_v46 = vmul.f32 %v312_v39, %v248_v17  ;;  %v329_v47 = vmul.f32 %v313_v40, %v267_v18  ;;  %v251_v49 = vadd.f32 %v250_v43, %v639_v48  ;;  %v270_v50 = vadd.f32 %v269_v44, %v639_v48  ;;  %v356_v39 = vld [vmem:[%s699_s1 + $0x40] sm:$0xff] }
 0x144   :  { %v318_v51 = vmin.f32 %v302_v41, 6.0  ;;  %v319_v52 = vmin.f32 %v303_v42, 6.0  ;;  %367 = vadd.xlane.f32.xlu0 %v366_v45 }
 0x145   :  { %v344_v53 = vmul.f32 0.16666667, %v328_v46  ;;  %v345_v54 = vmul.f32 0.16666667, %v329_v47  ;;  %v284_v55 = vadd.f32 3.0, %v251_v49  ;;  %v285_v56 = vadd.f32 3.0, %v270_v50 }
 0x146   :  { %v334_v57 = vmul.f32 %v318_v51, %v215_v31  ;;  %v335_v58 = vmul.f32 %v319_v52, %v234_v32  ;;  %v357_v46 = vld [vmem:[%s699_s1 + $0x48] sm:$0xff] }
 0x147   :  { %v300_v59 = vmax.f32 %v284_v55, 0.0  ;;  %v301_v60 = vmax.f32 %v285_v56, 0.0  ;;  %v406_v61 = vadd.f32 %v345_v54, %v344_v53 }
 0x148   :  { %v350_v0 = vmul.f32 0.16666667, %v334_v57  ;;  %v351_v1 = vmul.f32 0.16666667, %v335_v58 }
 0x149   :  { %v316_v62 = vmin.f32 %v300_v59, 6.0  ;;  %v317_v63 = vmin.f32 %v301_v60, 6.0  ;;  %407 = vadd.xlane.f32.xlu2 %v406_v61 }
 0x14a   :  { %v252_v2 = vpop.f32.mrf.mxu2  ;;  %v271_v3 = vpop.f32.mrf.mxu3  ;;  %v369_v13 = vadd.f32 %v351_v1, %v350_v0 }
 0x14b   :  { %v332_v48 = vmul.f32 %v316_v62, %v251_v49  ;;  %v333_v4 = vmul.f32 %v317_v63, %v270_v50  ;;  %v253_v5 = vadd.f32 %v252_v2, %v189_v19  ;;  %v272_v6 = vadd.f32 %v271_v3, %v189_v19  ;;  %v551_v19 = vpop.eup %550 }
 0x14c   :  { %v373_v24 = vmul.f32 256.0, %v551_v19  ;;  %vm377_vm4 = vweird.f32 %v551_v19 }
 0x14d   :  { %v348_v7 = vmul.f32 0.16666667, %v332_v48  ;;  %v349_v8 = vmul.f32 0.16666667, %v333_v4  ;;  %v288_v9 = vadd.f32 3.0, %v253_v5  ;;  %v289_v10 = vadd.f32 3.0, %v272_v6 }
 0x14e   :  { %v374_v25 = vsub.f32 1.0, %v373_v24  ;;  %v586_v24 = vmov 48.0  }
 0x14f   :  { %v304_v11 = vmax.f32 %v288_v9, 0.0  ;;  %v305_v12 = vmax.f32 %v289_v10, 0.0  ;;  %v409_v14 = vadd.f32 %v349_v8, %v348_v7  ;;  %552 = vrcp.f32 %v586_v24 }
 0x150   :  { %v375_v26 = vmul.f32 %v551_v19, %v374_v25 }
 0x151   :  { %v320_v15 = vmin.f32 %v304_v11, 6.0  ;;  %v321_v16 = vmin.f32 %v305_v12, 6.0  ;;  %370 = vadd.xlane.f32.xlu2 %v369_v13  ;;  %410 = vadd.xlane.f32.xlu1 %v409_v14  ;;  %v358_v12 = vlaneseq }
 0x152   :  { %v376_v30 = vadd.f32 %v551_v19, %v375_v26 }
 0x153   :  { %v336_v17 = vmul.f32 %v320_v15, %v253_v5  ;;  %v337_v18 = vmul.f32 %v321_v16, %v272_v6  ;;  %v359_v16 = vshrl.u32 %v358_v12, 7 }
 0x154   :  { %v378_v32 = vsel %vm377_vm4, %v551_v19, %v376_v30 }
 0x155   :  { %v352_v20 = vmul.f32 0.16666667, %v336_v17  ;;  %v353_v21 = vmul.f32 0.16666667, %v337_v18  ;;  %vm401_vm6 = vcmp.eq.s32.totalorder %v359_v16, 0  ;;  %vm436_vm7 = vcmp.eq.s32.totalorder %v359_v16, 1  ;;  %v553_v25 = vpop.eup %552 }
 0x156   :  { %v445_v26 = vmul.f32 48.0, %v553_v25  ;;  %vm449_vm9 = vweird.f32 %v553_v25 }
 0x157   :  { %v412_v22 = vadd.f32 %v353_v21, %v352_v20 }
 0x159   :  { %413 = vadd.xlane.f32.xlu0 %v412_v22 }
 0x1a7   :  { %v362_v27 = vpop.xlane.xlu0 %361 }
 0x1a8   :  { %v379_v35 = vmul.f32 %v378_v32, %v362_v27  ;;  %v446_v27 = vsub.f32 1.0, %v445_v26 }
 0x1aa   :  { %v383_v41 = vmul.f32 %v379_v35, %v354_v36 }
 0x1ac   :  { %v388_v45 = vsel %vm387_vm5, %v383_v41, 0.0 }
 0x1af   :  { %v365_v31 = vpop.xlane.xlu1 %364 }
 0x1b0   :  { %v380_v34 = vmul.f32 %v378_v32, %v365_v31 }
 0x1b2   :  { %v384_v40 = vmul.f32 %v380_v34, %v355_v37 }
 0x1b4   :  { %v405_v29 = vpop.xlane.xlu2 %404  ;;  %v389_v43 = vsel %vm387_vm5, %v384_v40, 0.0  ;;  %v482_v40 = vld [vmem:[%s699_s1 + $0x70] sm:$0xff] }
 0x1b5   :  { %v415_v50 = vmul.f32 %v405_v29, %v378_v32  ;;  %v390_v54 = vadd.f32 %v389_v43, %v388_v45  ;;  %v447_v29 = vmul.f32 %v553_v25, %v446_v27  ;;  %v480_v43 = vld [vmem:[%s699_s1 + $0x60] sm:$0xff] }
 0x1b7   :  { %v368_v33 = vpop.xlane.xlu0 %367  ;;  %v419_v58 = vmul.f32 %v415_v50, %v354_v36  ;;  %v448_v30 = vadd.f32 %v553_v25, %v447_v29  ;;  %v484_v36 = vld [vmem:[%s699_s1 + $0x80] sm:$0xff] }
 0x1b8   :  { %v381_v38 = vmul.f32 %v378_v32, %v368_v33 }
 0x1b9   :  { %v423_v1 = vsel %vm387_vm5, %v419_v58, 0.0  ;;  %v450_v31 = vsel %vm449_vm9, %v553_v25, %v448_v30 }
 0x1ba   :  { %v385_v42 = vmul.f32 %v381_v38, %v356_v39 }
 0x1bc   :  { %v408_v28 = vpop.xlane.xlu2 %407  ;;  %v391_v51 = vsel %vm387_vm5, %v385_v42, 0.0  ;;  %v479_v42 = vld [vmem:[%s699_s1 + $0x58] sm:$0xff] }
 0x1bd   :  { %v416_v44 = vmul.f32 %v408_v28, %v378_v32  ;;  %v392_v57 = vadd.f32 %v391_v51, %v390_v54  ;;  %v483_v28 = vld [vmem:[%s699_s1 + $0x78] sm:$0xff] }
 0x1be   :  { %v489_v38 = vpack.c.bf16 %v484_v36, %v483_v28 }
 0x1bf   :  { %v420_v55 = vmul.f32 %v416_v44, %v355_v37 }
 0x1c0   :  { %499 = vmatpush.bf16.msra.mxu0 %v489_v38 }
 0x1c1   :  { %v424_v62 = vsel %vm387_vm5, %v420_v55, 0.0  ;;  %v547_v55 = vld [vmem:[%s699_s1 + $0x50] ss:$0 sm:$0xff] }
 0x1c2   :  { %v425_v48 = vadd.f32 %v424_v62, %v423_v1 }
 0x1c4   :  { %v371_v47 = vpop.xlane.xlu2 %370  ;;  %v411_v49 = vpop.xlane.xlu1 %410 }
 0x1c5   :  { %v382_v52 = vmul.f32 %v378_v32, %v371_v47  ;;  %v417_v53 = vmul.f32 %v411_v49, %v378_v32 }
 0x1c7   :  { %v386_v56 = vmul.f32 %v382_v52, %v357_v46  ;;  %v421_v60 = vmul.f32 %v417_v53, %v356_v39  ;;  %v481_v39 = vld [vmem:[%s699_s1 + $0x68] sm:$0xff] }
 0x1c8   :  { %v488_v41 = vpack.c.bf16 %v482_v40, %v481_v39 }
 0x1c9   :  { %v393_v59 = vsel %vm387_vm5, %v386_v56, 0.0  ;;  %v426_v2 = vsel %vm387_vm5, %v421_v60, 0.0 }
 0x1ca   :  { %v394_v61 = vadd.f32 %v393_v59, %v392_v57  ;;  %v427_v7 = vadd.f32 %v426_v2, %v425_v48  ;;  %500 = vmatpush.bf16.msra.mxu0 %v488_v41  ;;  %v548_v57 = vld [vmem:[%s699_s1 + $0x51] ss:$0 sm:$0xff] }
 0x1cc   :  { %v395_v63 = vrot.slane %v394_v61, 4  ;;  %v414_v0 = vpop.xlane.xlu0 %413 }
 0x1cd   :  { %v418_v3 = vmul.f32 %v414_v0, %v378_v32 }
 0x1ce   :  { %v396_v4 = vadd.f32 %v395_v63, %v394_v61 }
 0x1cf   :  { %v422_v5 = vmul.f32 %v418_v3, %v357_v46  ;;  %v487_v46 = vpack.c.bf16 %v480_v43, %v479_v42  ;;  %v549_v3 = vld [vmem:[%s699_s1 + $0x88] ss:$0 sm:$0xff] }
 0x1d0   :  { %v397_v6 = vrot.slane %v396_v4, 2 }
 0x1d1   :  { %v428_v8 = vsel %vm387_vm5, %v422_v5, 0.0  ;;  %501 = vmatpush.bf16.msra.mxu0 %v487_v46 }
 0x1d2   :  { %v429_v9 = vadd.f32 %v428_v8, %v427_v7  ;;  %v398_v10 = vadd.f32 %v397_v6, %v396_v4 }
 0x1d4   :  { %v430_v11 = vrot.slane %v429_v9, 4  ;;  %v399_v14 = vrot.slane %v398_v10, 1 }
 0x1d6   :  { %v431_v13 = vadd.f32 %v430_v11, %v429_v9  ;;  %v400_v18 = vadd.f32 %v399_v14, %v398_v10 }
 0x1d8   :  { %v432_v15 = vrot.slane %v431_v13, 2  ;;  %v402_v22 = vsel %vm401_vm6, %v400_v18, 0.0 }
 0x1da   :  { %v433_v17 = vadd.f32 %v432_v15, %v431_v13 }
 0x1dc   :  { %v434_v20 = vrot.slane %v433_v17, 1 }
 0x1de   :  { %v435_v21 = vadd.f32 %v434_v20, %v433_v17 }
 0x1e0   :  { %v437_v23 = vsel %vm436_vm7, %v435_v21, %v402_v22 }
 0x1e1   :  { %v441_v19 = vsel %vm440_vm8, %v437_v23, 0.0 }
 0x1e2   :  { %442 = vadd.xlane.f32.xlu1 %v441_v19 }
 0x255   :  { %v443_v32 = vpop.xlane.xlu1 %442 }
 0x256   :  { %v451_v33 = vmul.f32 %v450_v31, %v443_v32 }
 0x258   :  { %v452_v34 = vsub.f32 %v437_v23, %v451_v33 }
 0x25a   :  { %v453_v35 = vmul.f32 %v452_v34, %v452_v34 }
 0x25c   :  { %v454_v37 = vsel %vm440_vm8, %v453_v35, 0.0 }
 0x25d   :  { %455 = vadd.xlane.f32.xlu2 %v454_v37 }
 0x2d0   :  { %v456_v44 = vpop.xlane.xlu2 %455 }
 0x2d1   :  { %v457_v45 = vmul.f32 %v456_v44, %v450_v31 }
 0x2d3   :  { %v458_v47 = vadd.f32 1e-05, %v457_v45 }
 0x2d5   :  { %554 = vrsqrt.f32 %v458_v47  ;;  %vm465_vm11 = vweird.f32 %v458_v47 }
 0x2db   :  { %v555_v49 = vpop.eup %554 }
 0x2dc   :  { %v460_v50 = vmul.f32 %v555_v49, %v458_v47  ;;  %vm466_vm10 = vweird.f32 %v555_v49 }
 0x2dd   :  { %vm467_vm12 = vmor %vm465_vm11, %vm466_vm10 }
 0x2de   :  { %v461_v51 = vmul.f32 %v555_v49, %v460_v50 }
 0x2e0   :  { %v462_v52 = vmul.f32 0.5, %v461_v51 }
 0x2e2   :  { %v463_v53 = vsub.f32 1.5, %v462_v52 }
 0x2e4   :  { %v464_v54 = vmul.f32 %v555_v49, %v463_v53 }
 0x2e6   :  { %v468_v56 = vsel %vm467_vm12, %v555_v49, %v464_v54 }
 0x2e7   :  { %v469_v58 = vmul.f32 %v468_v56, %v452_v34 }
 0x2e9   :  { %v471_v59 = vmul.f32 %v547_v55, %v469_v58 }
 0x2eb   :  { %v473_v60 = vadd.f32 %v548_v57, %v471_v59 }
 0x2ed   :  { %v474_v61 = vadd.f32 3.0, %v473_v60 }
 0x2ef   :  { %v475_v62 = vmax.f32 %v474_v61, 0.0 }
 0x2f1   :  { %v476_v63 = vmin.f32 %v475_v62, 6.0 }
 0x2f3   :  { %v477_v0 = vmul.f32 %v476_v63, %v473_v60 }
 0x2f5   :  { %v478_v1 = vmul.f32 0.16666667, %v477_v0 }
 0x2f7   :  { %v486_v2 = vpack.c.bf16 %v478_v1, %v478_v1 }
 0x2f9   :  { %536 = vmatmul.msk.bf16.vlgmr.msra.gmra.mxu0 %vm387_vm5, %v486_v2 }
 0x376   :  { %v503_v48 = vpop.f32.mrf.mxu0 }
 0x377   :  { %v504_v4 = vadd.f32 %v549_v3, %v503_v48 }
 0x379   :  { %507 = vst [vmem:[#allocation2] sm:$0x3] %v504_v4 }
 0x37a   :  { %518 = dma.vmem_to_hbm [thread:$0]  %s514_s22, 32, %s516_s25, [#allocation3]  }
 0x37e   :  { %v505_v5 = vpop.f32.mrf.mxu0 }
 0x37f   :  { %580 = dma.done.wait [#allocation3], 32  }
 0x380   :  { %581 = vsyncadd [#allocation3], 4294967264 }
 0x381   :  { %523 = vsyncpa [#allocation3], 1 }

</bundles_post_ra>
